<compile_context>
chip_gen: v7x
topology: tpu7x:2x2x1
jax: 0.10.0
libtpu: 0.0.40
codegen_flags: <defaults>
</compile_context>

<pallas_src>
import jax
import jax.numpy as jnp
from jax.experimental import pallas as pl
from jax.experimental.pallas import tpu as pltpu

EPS = 1e-5


def bn_relu_kernel(x_ref, scale_ref, bias_ref, o_ref):
    # x_ref: (TILE_M, L) tile; scale_ref/bias_ref: (TILE_M, 1) per-row params.
    x = x_ref[...].astype(jnp.float32)
    y = x * scale_ref[...] + bias_ref[...]       # folded eval-mode BatchNorm2d
    o_ref[...] = jnp.maximum(y, 0.0).astype(o_ref.dtype)   # ReLU


def bn_relu(x_nchw, gamma, beta, running_mean, running_var):
    """x_nchw: (N, C, H, W). Params: (C,) each. Returns same shape/dtype as x."""
    N, C, H, W = x_nchw.shape
    L = H * W
    M = N * C

    # Free (no-data-movement) reshape: channels stay contiguous, H*W on lanes.
    x2d = x_nchw.reshape(M, L)

    # Fold BN into scale/bias once (C elements), then tile per (n, c) row.
    g = gamma.astype(jnp.float32)
    b = beta.astype(jnp.float32)
    mu = running_mean.astype(jnp.float32)
    var = running_var.astype(jnp.float32)
    scale_c = g * jax.lax.rsqrt(var + EPS)
    bias_c = b - mu * scale_c
    scale_rows = jnp.tile(scale_c, N).reshape(M, 1)
    bias_rows = jnp.tile(bias_c, N).reshape(M, 1)

    # Pick a row-tile: ~2 MiB per input block (well inside v7x's scoped VMEM
    # even with double-buffered input+output), multiple of 8 rows.
    bytes_per_row = L * x2d.dtype.itemsize
    max_rows = max(8, (2 * 1024 * 1024) // max(bytes_per_row, 1))
    if M <= max_rows:
        tile_m = M                       # full extent -> always a legal block
    else:
        tile_m = (max_rows // 8) * 8     # multiple of 8 -> legal block shape

    grid = (pl.cdiv(M, tile_m),)

    out2d = pl.pallas_call(
        bn_relu_kernel,
        out_shape=jax.ShapeDtypeStruct((M, L), x_nchw.dtype),
        grid_spec=pltpu.PrefetchScalarGridSpec(
            num_scalar_prefetch=0,
            grid=grid,
            in_specs=[
                pl.BlockSpec((tile_m, L), lambda i: (i, 0)),
                pl.BlockSpec((tile_m, 1), lambda i: (i, 0)),
                pl.BlockSpec((tile_m, 1), lambda i: (i, 0)),
            ],
            out_specs=pl.BlockSpec((tile_m, L), lambda i: (i, 0)),
        ),
        compiler_params=pltpu.CompilerParams(
            dimension_semantics=("parallel",),
        ),
    )(x2d, scale_rows, bias_rows)

    return out2d.reshape(N, C, H, W)


if __name__ == "__main__":
    key = jax.random.PRNGKey(0)
    kx, kg, kb, km, kv = jax.random.split(key, 5)

    N, C, H, W = 2, 4, 16, 16
    x = jax.random.normal(kx, (N, C, H, W), dtype=jnp.float32)

    # Deterministic synthetic BatchNorm2d parameters (per-channel).
    gamma = 1.0 + 0.1 * jax.random.normal(kg, (C,), dtype=jnp.float32)
    beta = 0.1 * jax.random.normal(kb, (C,), dtype=jnp.float32)
    running_mean = 0.05 * jax.random.normal(km, (C,), dtype=jnp.float32)
    running_var = jnp.abs(jax.random.normal(kv, (C,), dtype=jnp.float32)) + 0.5

    out = bn_relu(x, gamma, beta, running_mean, running_var)
    out = jax.block_until_ready(out)

    # Reference check in plain JAX (same math as eval-mode BN + ReLU).
    scale = gamma / jnp.sqrt(running_var + EPS)
    ref = jnp.maximum(
        (x - running_mean[None, :, None, None]) * scale[None, :, None, None]
        + beta[None, :, None, None],
        0.0,
    )
    assert out.shape == (N, C, H, W)
    assert jnp.allclose(out, ref, atol=1e-5, rtol=1e-5)

    print("KERNEL_OK")
</pallas_src>

<mosaic_0001>
module attributes {stable_mosaic.version = 11 : i64} {
  func.func @bn_relu_kernel(%arg0: i32, %arg1: memref<8x256xf32, #tpu.memory_space<vmem>>, %arg2: memref<8x1xf32, #tpu.memory_space<vmem>>, %arg3: memref<8x1xf32, #tpu.memory_space<vmem>>, %arg4: memref<8x256xf32, #tpu.memory_space<vmem>>) attributes {dimension_semantics = [#tpu.dimension_semantics<parallel>], iteration_bounds = array<i64: 1>, scalar_prefetch = 0 : i64, scratch_operands = 0 : i64, tpu.core_type = #tpu.core_type<tc>, window_params = [{transform_indices = @transform_0, window_bounds = array<i64: 8, 256>}, {transform_indices = @transform_1, window_bounds = array<i64: 8, 1>}, {transform_indices = @transform_2, window_bounds = array<i64: 8, 1>}, {transform_indices = @transform_3, window_bounds = array<i64: 8, 256>}]} {
    %c0 = arith.constant 0 : index
    %c0_0 = arith.constant 0 : index
    %0 = vector.load %arg1[%c0, %c0_0] : memref<8x256xf32, #tpu.memory_space<vmem>>, vector<8x256xf32>
    %c0_1 = arith.constant 0 : index
    %c0_2 = arith.constant 0 : index
    %1 = vector.load %arg2[%c0_1, %c0_2] : memref<8x1xf32, #tpu.memory_space<vmem>>, vector<8x1xf32>
    %2 = vector.broadcast %1 : vector<8x1xf32> to vector<8x256xf32>
    %3 = arith.mulf %0, %2 : vector<8x256xf32>
    %c0_3 = arith.constant 0 : index
    %c0_4 = arith.constant 0 : index
    %4 = vector.load %arg3[%c0_3, %c0_4] : memref<8x1xf32, #tpu.memory_space<vmem>>, vector<8x1xf32>
    %5 = vector.broadcast %4 : vector<8x1xf32> to vector<8x256xf32>
    %6 = arith.addf %3, %5 : vector<8x256xf32>
    %cst = arith.constant 0.000000e+00 : f32
    %7 = vector.broadcast %cst : f32 to vector<8x256xf32>
    %8 = arith.maximumf %6, %7 : vector<8x256xf32>
    %c0_5 = arith.constant 0 : index
    %c0_6 = arith.constant 0 : index
    %9 = vector.load %arg4[%c0_5, %c0_6] : memref<8x256xf32, #tpu.memory_space<vmem>>, vector<8x256xf32>
    tpu.vector_store %arg4[%c0_5, %c0_6], %8 {strides = array<i32>} : memref<8x256xf32, #tpu.memory_space<vmem>>, vector<8x256xf32>,
    return
  }
  func.func @transform_0(%arg0: i32) -> (i32, i32) {
    %c0_i32 = arith.constant 0 : i32
    %c0_i32_0 = arith.constant 0 : i32
    return %arg0, %c0_i32 : i32, i32
  }
  func.func @transform_1(%arg0: i32) -> (i32, i32) {
    %c0_i32 = arith.constant 0 : i32
    %c0_i32_0 = arith.constant 0 : i32
    return %arg0, %c0_i32 : i32, i32
  }
  func.func @transform_2(%arg0: i32) -> (i32, i32) {
    %c0_i32 = arith.constant 0 : i32
    %c0_i32_0 = arith.constant 0 : i32
    return %arg0, %c0_i32 : i32, i32
  }
  func.func @transform_3(%arg0: i32) -> (i32, i32) {
    %c0_i32 = arith.constant 0 : i32
    %c0_i32_0 = arith.constant 0 : i32
    return %arg0, %c0_i32 : i32, i32
  }
}

</mosaic_0001>

<bundles_post_ra>
// kernel: tpu_custom_call.1
= control target key start
LH: loop header
LB: loop body
LE: loop exit
PB: predicated region body
PF: predicated region fallthrough
CT: control target
= control target key end

     0   :  { %s124_s0 = inlined_call_operand.vmem [shape: f32[8,256], index: 0, kind: input, shape index: {}]   ;;  %s125_s1 = inlined_call_operand.vmem [shape: f32[8,1], index: 1, kind: input, shape index: {}]   ;;  %s126_s2 = inlined_call_operand.vmem [shape: f32[8,1], index: 2, kind: input, shape index: {}]   ;;  %s127_s3 = inlined_call_operand.hbm [shape: f32[8,256], index: 3, kind: output, shape index: {}]  }
   0x1   :  { %v17_v0 = vld [vmem:[%s125_s1] sm:$0xff] }
   0x2   :  { %8 = vsyncpa [#allocation3], 0  ;;  %v78_v1 = vmov 0   ;;  %v25_v2 = vld [vmem:[%s126_s2] sm:$0xff]  ;;  %v16_v5 = vld [vmem:[%s124_s0 + $0x8] sm:$0xff]  ;;  %s79_s1 = smov [#allocation2]  }
   0x3   :  { %53 = vset.pattern.permute.xlu0 %v78_v1  ;;  %v15_v4 = vld [vmem:[%s124_s0] sm:$0xff]  ;;  %s43_s20 = sshll.u32 %s79_s1, 4  ;;  %s44_s20 = int_to_ptr.vmem [resolvable:$true] %s43_s20 }
   0x4   :  { %20 = vperm.xlu0 %53, %v17_v0   ;;  %s54_s2 = scalar_lea.vmem %s44_s20, 256  ;;  %p59_p1 = scmp.lt.s32.totalorder %s44_s20, %s44_s20 }
   0x5   :  { %p55_p0 = scmp.ne.s32.totalorder %s44_s20, %s54_s2  ;;  %p60_p2 = scmp.lt.s32.totalorder %s54_s2, %s54_s2 }
   0x7   :  { %p61_p3 = por %p60_p2, %p59_p1 }
   0x8   :  { %28 = vperm.xlu0 %53, %v25_v2  }
   0x9   :  { %p62_p4 = pnand %p61_p3, %p55_p0 }
  0x83   :  { %v21_v3 = vpop.permute.xlu0 %20 }
  0x84   :  { %v23_v6 = vmul.f32 %v21_v3, %v15_v4  ;;  %v24_v7 = vmul.f32 %v21_v3, %v16_v5 }
  0x87   :  { %v29_v8 = vpop.permute.xlu0 %28 }
  0x88   :  { %v31_v9 = vadd.f32 %v29_v8, %v23_v6  ;;  %v32_v10 = vadd.f32 %v29_v8, %v24_v7 }
  0x8a   :  { %v33_v11 = vmax.f32 %v31_v9, 0.0  ;;  %v34_v12 = vmax.f32 %v32_v10, 0.0 }
  0x8c   :  { %35 = vst [vmem:[#allocation2] sm:$0xff] %v33_v11  ;;  %36 = vst [vmem:[#allocation2 + $0x8] sm:$0xff] %v34_v12 }
  0x8d   :  { %65 = shalt.err (!%p62_p4)
}
  0x8e   :  { %s66_s22 = scalar_lea.hbm %s127_s3, 256 }
  0x8f   :  { %p67_p5 = scmp.ne.s32.totalorder %s127_s3, %s66_s22  ;;  %p70_p6 = scmp.lt.u32.totalorder %s66_s22, %s127_s3 }
  0x91   :  { %p72_p7 = pnand %p70_p6, %p67_p5 }
  0x93   :  { %75 = shalt.err (!%p72_p7)
}
  0x94   :  { %46 = dma.vmem_to_hbm [thread:$0]  %s44_s20, 256, %s127_s3, [#allocation3]  }
  0x95   :  { %76 = dma.done.wait [#allocation3], 256  }
  0x96   :  { %77 = vsyncadd [#allocation3], 4294967040 }
  0x97   :  { %50 = vsyncpa [#allocation3], 1 }

</bundles_post_ra>
